<compile_context>
chip_gen: v7x
topology: tpu7x:2x2x1
jax: 0.10.0
libtpu: 0.0.40
codegen_flags: <defaults>
</compile_context>

<pallas_src>
import functools
import math

import jax
import jax.numpy as jnp
from jax import lax
from jax.experimental import pallas as pl
from jax.experimental.pallas import tpu as pltpu


# ----------------------------------------------------------------------------
# Config (mirrors the torch `config` object at small, consistent shapes).
# ----------------------------------------------------------------------------
VOCAB_SIZE = 64
D_EMB = 32          # config.dim_head
CHUNK_SIZE = 8      # config.chunk_size (== T)
NB_HEADS = 4        # config.nb_heads   (D_EMB % NB_HEADS == 0)
NB_BLOCKS = 2       # config.nb_blocks
LN_EPS = 1e-5


def _round_up(x, m):
    return (x + m - 1) // m * m


# ----------------------------------------------------------------------------
# Kernel 1: one AttentionBlock.  Grid over batch; each step owns a (T, d) slab.
# ----------------------------------------------------------------------------
def attention_block_kernel(x_ref, mask_ref, wq_ref, wk_ref, wv_ref,
                           w1_ref, w2_ref, g1_ref, b1_ref, g2_ref, b2_ref,
                           out_ref, *, nb_heads: int):
    x = x_ref[0]                                   # (T, d) f32
    T, d = x.shape
    dh = d // nb_heads
    scale = 1.0 / math.sqrt(dh)

    def layer_norm(v, g, b):
        mu = jnp.mean(v, axis=-1, keepdims=True)
        var = jnp.mean(jnp.square(v - mu), axis=-1, keepdims=True)
        return (v - mu) * lax.rsqrt(var + LN_EPS) * g + b

    # Contract the "in" axis of PyTorch-layout (out, in) weights directly on
    # the MXU (no transpose materialised).
    def linear_nt(v, w_ref_):
        return lax.dot_general(v, w_ref_[...], (((1,), (1,)), ((), ())),
                               preferred_element_type=jnp.float32)

    # --- multi-head attention on layer_norm1(x) -----------------------------
    xn = layer_norm(x, g1_ref[...], b1_ref[...])
    q = linear_nt(xn, wq_ref)                      # (T, d); heads along lanes
    k = linear_nt(xn, wk_ref)
    v = linear_nt(xn, wv_ref)

    # masked_fill on the all-ones buffer (a no-op, kept for fidelity).
    mask = mask_ref[...]
    mask = jnp.where(mask == 0.0, -jnp.inf, mask)

    # Per-head attention via lane masking: zeroing the other heads' lanes is
    # mathematically identical to slice-per-head + concat, but keeps every
    # matmul full-width (no sub-128-lane slicing / concatenation).
    col = lax.broadcasted_iota(jnp.int32, (T, d), 1)
    mh = jnp.zeros((T, d), jnp.float32)
    for h in range(nb_heads):
        hmask = jnp.logical_and(col >= h * dh, col < (h + 1) * dh)
        qh = jnp.where(hmask, q, 0.0)
        kh = jnp.where(hmask, k, 0.0)
        vh = jnp.where(hmask, v, 0.0)
        # q @ k^T / sqrt(d_head)
        attn = lax.dot_general(qh, kh, (((1,), (1,)), ((), ())),
                               preferred_element_type=jnp.float32) * scale
        # attn @ mask  (mask is the all-ones register_buffer)
        attn = jnp.dot(attn, mask, preferred_element_type=jnp.float32)
        # softmax over torch dim=1 == axis 0 of the per-batch (T, T) slab
        m = jnp.max(attn, axis=0, keepdims=True)
        e = jnp.exp(attn - m)
        p = e / jnp.sum(e, axis=0, keepdims=True)
        mh = mh + jnp.dot(p, vh, preferred_element_type=jnp.float32)

    x1 = x + mh

    # --- feed-forward on layer_norm2(x1), residual ---------------------------
    xn2 = layer_norm(x1, g2_ref[...], b2_ref[...])
    h1 = jnp.maximum(linear_nt(xn2, w1_ref), 0.0)
    h2 = linear_nt(h1, w2_ref)
    # TODO(synk): nn.Dropout(0.2) is identity in eval mode; training-mode
    # dropout would need pltpu.prng_seed/prng_random_bits masking here.
    out_ref[0] = x1 + h2


def attention_block(x, mask, wq, wk, wv, w1, w2, g1, b1, g2, b2, *, nb_heads):
    bs, T, d = x.shape
    kern = functools.partial(attention_block_kernel, nb_heads=nb_heads)
    wspec = pl.BlockSpec((d, d), lambda b: (0, 0))
    vspec = pl.BlockSpec((1, d), lambda b: (0, 0))
    return pl.pallas_call(
        kern,
        out_shape=jax.ShapeDtypeStruct((bs, T, d), jnp.float32),
        grid=(bs,),
        in_specs=[
            pl.BlockSpec((1, T, d), lambda b: (b, 0, 0)),
            pl.BlockSpec((T, T), lambda b: (0, 0)),
            wspec, wspec, wspec, wspec, wspec,
            vspec, vspec, vspec, vspec,
        ],
        out_specs=pl.BlockSpec((1, T, d), lambda b: (b, 0, 0)),
        compiler_params=pltpu.CompilerParams(
            dimension_semantics=("parallel",)),
    )(x, mask, wq, wk, wv, w1, w2, g1, b1, g2, b2)


# ----------------------------------------------------------------------------
# Kernel 2: final vocab projection, flattened + lane-dense + bf16 MXU.
# ----------------------------------------------------------------------------
def linear_head_kernel(x_ref, w_ref, b_ref, o_ref):
    # x_ref: (tm, dp) bf16, w_ref: (dp, tv) bf16, b_ref: (1, tv) f32
    o_ref[...] = (jnp.dot(x_ref[...], w_ref[...],
                          preferred_element_type=jnp.float32)
                  + b_ref[...])


def linear_head(x2, w_t, b2):
    """x2: (Mp, dp) bf16, w_t: (dp, Vp) bf16, b2: (1, Vp) f32 -> (Mp, Vp) f32."""
    Mp, dp = x2.shape
    Vp = w_t.shape[1]
    tm = Mp if Mp <= 256 else 256
    tv = 512 if Vp % 512 == 0 else (256 if Vp % 256 == 0 else 128)
    tv = min(tv, Vp)
    grid = (Mp // tm, Vp // tv)
    return pl.pallas_call(
        linear_head_kernel,
        out_shape=jax.ShapeDtypeStruct((Mp, Vp), jnp.float32),
        grid=grid,
        in_specs=[
            pl.BlockSpec((tm, dp), lambda i, j: (i, 0)),
            pl.BlockSpec((dp, tv), lambda i, j: (0, j)),
            pl.BlockSpec((1, tv), lambda i, j: (0, j)),
        ],
        out_specs=pl.BlockSpec((tm, tv), lambda i, j: (i, j)),
        compiler_params=pltpu.CompilerParams(
            dimension_semantics=("parallel", "parallel"),
            vmem_limit_bytes=32 * 1024 * 1024),
    )(x2, w_t, b2)


# ----------------------------------------------------------------------------
# Full forward.
# ----------------------------------------------------------------------------
def bigram_attn_forward(idx, params):
    bs, T = idx.shape
    # Glue: embedding gather + positional add (f32, XLA).
    # TODO(synk): at large bs*T, fuse this gather into the first Pallas kernel
    # via PrefetchScalarGridSpec(num_scalar_prefetch=1) + pl.Element row maps.
    x = params["emb"][idx] + params["pos"][None, :T, :]          # (bs, T, d)

    for blk in params["blocks"]:
        x = attention_block(x, params["mask"], *blk, nb_heads=NB_HEADS)

    # Flatten to (M, d), pad to aligned tiles, bf16 inputs for the MXU.
    d = x.shape[-1]
    M = bs * T
    x2 = x.reshape(M, d)
    dp = params["w_t_pad"].shape[0]
    if dp != d:
        x2 = jnp.pad(x2, ((0, 0), (0, dp - d)))
    Mp = _round_up(M, 8) if M <= 256 else _round_up(M, 256)
    if Mp != M:
        x2 = jnp.pad(x2, ((0, Mp - M), (0, 0)))
    logits = linear_head(x2.astype(jnp.bfloat16),
                         params["w_t_pad"], params["b_pad"])
    return logits[:M, :VOCAB_SIZE]                               # (bs*T, vocab)


# ----------------------------------------------------------------------------
# Plain-JAX reference (mirrors the PyTorch module, eval-mode dropout).
# ----------------------------------------------------------------------------
def reference_forward(idx, params):
    bs, T = idx.shape
    dh = D_EMB // NB_HEADS
    with jax.default_matmul_precision("highest"):
        x = params["emb"][idx] + params["pos"][None, :T, :]
        mask = params["mask"]
        mask = jnp.where(mask == 0.0, -jnp.inf, mask)
        for (wq, wk, wv, w1, w2, g1, b1, g2, b2) in params["blocks"]:
            def ln(v, g, b):
                mu = v.mean(-1, keepdims=True)
                var = ((v - mu) ** 2).mean(-1, keepdims=True)
                return (v - mu) / jnp.sqrt(var + LN_EPS) * g + b
            xn = ln(x, g1, b1)
            q, k, v = xn @ wq.T, xn @ wk.T, xn @ wv.T
            heads = []
            for h in range(NB_HEADS):
                qh = q[..., h * dh:(h + 1) * dh]
                kh = k[..., h * dh:(h + 1) * dh]
                vh = v[..., h * dh:(h + 1) * dh]
                attn = qh @ jnp.swapaxes(kh, -1, -2) / math.sqrt(dh)
                attn = attn @ mask
                p = jax.nn.softmax(attn, axis=1)
                heads.append(p @ vh)
            x = x + jnp.concatenate(heads, axis=-1)
            xn2 = ln(x, g2, b2)
            x = x + jnp.maximum(xn2 @ w1.T, 0.0) @ w2.T
        x2 = x.reshape(bs * T, D_EMB)
        logits = (jnp.dot(x2.astype(jnp.bfloat16),
                          params["w_lin"].T.astype(jnp.bfloat16),
                          preferred_element_type=jnp.float32)
                  + params["b_lin"][None, :])
    return logits


if __name__ == "__main__":
    key = jax.random.PRNGKey(0)
    keys = jax.random.split(key, 6)
    bs, T = 2, CHUNK_SIZE
    bound = 1.0 / math.sqrt(D_EMB)

    emb = jax.random.normal(keys[0], (VOCAB_SIZE, D_EMB), jnp.float32)
    pos = jax.random.normal(keys[1], (CHUNK_SIZE, D_EMB), jnp.float32)

    blocks = []
    for bkey in jax.random.split(keys[2], NB_BLOCKS):
        ks = jax.random.split(bkey, 9)
        u = lambda k, shp: jax.random.uniform(k, shp, jnp.float32, -bound, bound)
        wq, wk, wv = u(ks[0], (D_EMB, D_EMB)), u(ks[1], (D_EMB, D_EMB)), u(ks[2], (D_EMB, D_EMB))
        w1, w2 = u(ks[3], (D_EMB, D_EMB)), u(ks[4], (D_EMB, D_EMB))
        g1 = 1.0 + 0.1 * jax.random.normal(ks[5], (1, D_EMB), jnp.float32)
        b1 = 0.1 * jax.random.normal(ks[6], (1, D_EMB), jnp.float32)
        g2 = 1.0 + 0.1 * jax.random.normal(ks[7], (1, D_EMB), jnp.float32)
        b2 = 0.1 * jax.random.normal(ks[8], (1, D_EMB), jnp.float32)
        blocks.append((wq, wk, wv, w1, w2, g1, b1, g2, b2))

    w_lin = jax.random.uniform(keys[3], (VOCAB_SIZE, D_EMB), jnp.float32, -bound, bound)
    b_lin = jax.random.uniform(keys[4], (VOCAB_SIZE,), jnp.float32, -bound, bound)

    # Head weights prepared ONCE: pad vocab -> lane-dense multiple of 128,
    # pad d -> multiple of 8, pre-transpose, cast to bf16 for the MXU.
    Vp = _round_up(VOCAB_SIZE, 128)
    dp = _round_up(D_EMB, 8)
    w_pad = jnp.zeros((Vp, dp), jnp.float32).at[:VOCAB_SIZE, :D_EMB].set(w_lin)
    w_t_pad = w_pad.T.astype(jnp.bfloat16)                       # (dp, Vp)
    b_pad = jnp.zeros((1, Vp), jnp.float32).at[0, :VOCAB_SIZE].set(b_lin)

    mask = jnp.ones((CHUNK_SIZE, CHUNK_SIZE), jnp.float32)       # register_buffer

    params = {"emb": emb, "pos": pos, "mask": mask, "blocks": blocks,
              "w_t_pad": w_t_pad, "b_pad": b_pad}

    idx = jax.random.randint(keys[5], (bs, T), 0, VOCAB_SIZE, dtype=jnp.int32)

    out = jax.jit(bigram_attn_forward)(idx, params)
    out = jax.block_until_ready(out)
    assert out.shape == (bs * T, VOCAB_SIZE)

    ref = reference_forward(idx, {**params, "w_lin": w_lin, "b_lin": b_lin})
    max_err = float(jnp.max(jnp.abs(out - ref)))
    assert jnp.allclose(out, ref, atol=5e-2, rtol=5e-2), f"max_err={max_err}"

    print("KERNEL_OK")
</pallas_src>

<mosaic_0001>
module attributes {stable_mosaic.version = 11 : i64} {
  func.func @linear_head_kernel(%arg0: i32, %arg1: i32, %arg2: memref<16x32xbf16, #tpu.memory_space<vmem>>, %arg3: memref<32x128xbf16, #tpu.memory_space<vmem>>, %arg4: memref<1x128xf32, #tpu.memory_space<vmem>>, %arg5: memref<16x128xf32, #tpu.memory_space<vmem>>) attributes {dimension_semantics = [#tpu.dimension_semantics<parallel>, #tpu.dimension_semantics<parallel>], iteration_bounds = array<i64: 1, 1>, scalar_prefetch = 0 : i64, scratch_operands = 0 : i64, tpu.core_type = #tpu.core_type<tc>, window_params = [{transform_indices = @transform_0, window_bounds = array<i64: 16, 32>}, {transform_indices = @transform_1, window_bounds = array<i64: 32, 128>}, {transform_indices = @transform_2, window_bounds = array<i64: 1, 128>}, {transform_indices = @transform_3, window_bounds = array<i64: 16, 128>}]} {
    %c0 = arith.constant 0 : index
    %c0_0 = arith.constant 0 : index
    %0 = vector.load %arg2[%c0, %c0_0] : memref<16x32xbf16, #tpu.memory_space<vmem>>, vector<16x32xbf16>
    %c0_1 = arith.constant 0 : index
    %c0_2 = arith.constant 0 : index
    %1 = vector.load %arg3[%c0_1, %c0_2] : memref<32x128xbf16, #tpu.memory_space<vmem>>, vector<32x128xbf16>
    %cst = arith.constant dense<0.000000e+00> : vector<16x128xf32>
    %2 = tpu.matmul %0, %1, %cst {dimension_numbers = #tpu.dot_dimension_numbers<[1], [0], [0], [1], [0, 0, 1, 1], [], []>} : vector<16x32xbf16>, vector<32x128xbf16>, vector<16x128xf32> -> vector<16x128xf32>
    %c0_3 = arith.constant 0 : index
    %c0_4 = arith.constant 0 : index
    %3 = vector.load %arg4[%c0_3, %c0_4] : memref<1x128xf32, #tpu.memory_space<vmem>>, vector<1x128xf32>
    %4 = vector.broadcast %3 : vector<1x128xf32> to vector<16x128xf32>
    %5 = arith.addf %2, %4 : vector<16x128xf32>
    %c0_5 = arith.constant 0 : index
    %c0_6 = arith.constant 0 : index
    %6 = vector.load %arg5[%c0_5, %c0_6] : memref<16x128xf32, #tpu.memory_space<vmem>>, vector<16x128xf32>
    tpu.vector_store %arg5[%c0_5, %c0_6], %5 {strides = array<i32>} : memref<16x128xf32, #tpu.memory_space<vmem>>, vector<16x128xf32>,
    return
  }
  func.func @transform_0(%arg0: i32, %arg1: i32) -> (i32, i32) {
    %c0_i32 = arith.constant 0 : i32
    %c0_i32_0 = arith.constant 0 : i32
    return %arg0, %c0_i32 : i32, i32
  }
  func.func @transform_1(%arg0: i32, %arg1: i32) -> (i32, i32) {
    %c0_i32 = arith.constant 0 : i32
    %c0_i32_0 = arith.constant 0 : i32
    return %c0_i32, %arg1 : i32, i32
  }
  func.func @transform_2(%arg0: i32, %arg1: i32) -> (i32, i32) {
    %c0_i32 = arith.constant 0 : i32
    %c0_i32_0 = arith.constant 0 : i32
    return %c0_i32, %arg1 : i32, i32
  }
  func.func @transform_3(%arg0: i32, %arg1: i32) -> (i32, i32) {
    %c0_i32 = arith.constant 0 : i32
    return %arg0, %arg1 : i32, i32
  }
}

module attributes {stable_mosaic.version = 11 : i64} {
  func.func @attention_block_kernel(%arg0: i32, %arg1: memref<1x8x32xf32, #tpu.memory_space<vmem>>, %arg2: memref<8x8xf32, #tpu.memory_space<vmem>>, %arg3: memref<32x32xf32, #tpu.memory_space<vmem>>, %arg4: memref<32x32xf32, #tpu.memory_space<vmem>>, %arg5: memref<32x32xf32, #tpu.memory_space<vmem>>, %arg6: memref<32x32xf32, #tpu.memory_space<vmem>>, %arg7: memref<32x32xf32, #tpu.memory_space<vmem>>, %arg8: memref<1x32xf32, #tpu.memory_space<vmem>>, %arg9: memref<1x32xf32, #tpu.memory_space<vmem>>, %arg10: memref<1x32xf32, #tpu.memory_space<vmem>>, %arg11: memref<1x32xf32, #tpu.memory_space<vmem>>, %arg12: memref<1x8x32xf32, #tpu.memory_space<vmem>>) attributes {dimension_semantics = [#tpu.dimension_semantics<parallel>], iteration_bounds = array<i64: 2>, scalar_prefetch = 0 : i64, scratch_operands = 0 : i64, tpu.core_type = #tpu.core_type<tc>, window_params = [{transform_indices = @transform_0, window_bounds = array<i64: 1, 8, 32>}, {pipeline_mode = #tpu.pipeline_mode<synchronous>, transform_indices = @transform_1, window_bounds = array<i64: 8, 8>}, {pipeline_mode = #tpu.pipeline_mode<synchronous>, transform_indices = @transform_2, window_bounds = array<i64: 32, 32>}, {pipeline_mode = #tpu.pipeline_mode<synchronous>, transform_indices = @transform_3, window_bounds = array<i64: 32, 32>}, {pipeline_mode = #tpu.pipeline_mode<synchronous>, transform_indices = @transform_4, window_bounds = array<i64: 32, 32>}, {pipeline_mode = #tpu.pipeline_mode<synchronous>, transform_indices = @transform_5, window_bounds = array<i64: 32, 32>}, {pipeline_mode = #tpu.pipeline_mode<synchronous>, transform_indices = @transform_6, window_bounds = array<i64: 32, 32>}, {pipeline_mode = #tpu.pipeline_mode<synchronous>, transform_indices = @transform_7, window_bounds = array<i64: 1, 32>}, {pipeline_mode = #tpu.pipeline_mode<synchronous>, transform_indices = @transform_8, window_bounds = array<i64: 1, 32>}, {pipeline_mode = #tpu.pipeline_mode<synchronous>, transform_indices = @transform_9, window_bounds = array<i64: 1, 32>}, {pipeline_mode = #tpu.pipeline_mode<synchronous>, transform_indices = @transform_10, window_bounds = array<i64: 1, 32>}, {transform_indices = @transform_11, window_bounds = array<i64: 1, 8, 32>}]} {
    %c0 = arith.constant 0 : index
    %c0_0 = arith.constant 0 : index
    %c0_1 = arith.constant 0 : index
    %0 = vector.load %arg1[%c0, %c0_0, %c0_1] : memref<1x8x32xf32, #tpu.memory_space<vmem>>, vector<1x8x32xf32>
    %1 = vector.shape_cast %0 : vector<1x8x32xf32> to vector<8x32xf32>
    %c0_2 = arith.constant 0 : index
    %c0_3 = arith.constant 0 : index
    %2 = vector.load %arg8[%c0_2, %c0_3] : memref<1x32xf32, #tpu.memory_space<vmem>>, vector<1x32xf32>
    %c0_4 = arith.constant 0 : index
    %c0_5 = arith.constant 0 : index
    %3 = vector.load %arg9[%c0_4, %c0_5] : memref<1x32xf32, #tpu.memory_space<vmem>>, vector<1x32xf32>
    %cst = arith.constant dense<0.000000e+00> : vector<8xf32>
    %4 = vector.multi_reduction <add>, %1, %cst [1] : vector<8x32xf32> to vector<8xf32>
    %5 = vector.shape_cast %4 : vector<8xf32> to vector<8x1xf32>
    %cst_6 = arith.constant 3.200000e+01 : f32
    %6 = vector.broadcast %cst_6 : f32 to vector<8x1xf32>
    %7 = arith.divf %5, %6 : vector<8x1xf32>
    %8 = vector.broadcast %7 : vector<8x1xf32> to vector<8x32xf32>
    %9 = arith.subf %1, %8 : vector<8x32xf32>
    %10 = arith.mulf %9, %9 : vector<8x32xf32>
    %cst_7 = arith.constant dense<0.000000e+00> : vector<8xf32>
    %11 = vector.multi_reduction <add>, %10, %cst_7 [1] : vector<8x32xf32> to vector<8xf32>
    %12 = vector.shape_cast %11 : vector<8xf32> to vector<8x1xf32>
    %cst_8 = arith.constant 3.200000e+01 : f32
    %13 = vector.broadcast %cst_8 : f32 to vector<8x1xf32>
    %14 = arith.divf %12, %13 : vector<8x1xf32>
    %15 = vector.broadcast %7 : vector<8x1xf32> to vector<8x32xf32>
    %16 = arith.subf %1, %15 : vector<8x32xf32>
    %cst_9 = arith.constant 9.99999974E-6 : f32
    %17 = vector.broadcast %cst_9 : f32 to vector<8x1xf32>
    %18 = arith.addf %14, %17 : vector<8x1xf32>
    %19 = math.rsqrt %18 : vector<8x1xf32>
    %20 = vector.broadcast %19 : vector<8x1xf32> to vector<8x32xf32>
    %21 = arith.mulf %16, %20 : vector<8x32xf32>
    %22 = vector.broadcast %2 : vector<1x32xf32> to vector<8x32xf32>
    %23 = arith.mulf %21, %22 : vector<8x32xf32>
    %24 = vector.broadcast %3 : vector<1x32xf32> to vector<8x32xf32>
    %25 = arith.addf %23, %24 : vector<8x32xf32>
    %c0_10 = arith.constant 0 : index
    %c0_11 = arith.constant 0 : index
    %26 = vector.load %arg3[%c0_10, %c0_11] : memref<32x32xf32, #tpu.memory_space<vmem>>, vector<32x32xf32>
    %cst_12 = arith.constant dense<0.000000e+00> : vector<8x32xf32>
    %27 = tpu.matmul %25, %26, %cst_12 {dimension_numbers = #tpu.dot_dimension_numbers<[1], [1], [0], [0], [0, 0, 1, 0], [], []>} : vector<8x32xf32>, vector<32x32xf32>, vector<8x32xf32> -> vector<8x32xf32>
    %c0_13 = arith.constant 0 : index
    %c0_14 = arith.constant 0 : index
    %28 = vector.load %arg4[%c0_13, %c0_14] : memref<32x32xf32, #tpu.memory_space<vmem>>, vector<32x32xf32>
    %cst_15 = arith.constant dense<0.000000e+00> : vector<8x32xf32>
    %29 = tpu.matmul %25, %28, %cst_15 {dimension_numbers = #tpu.dot_dimension_numbers<[1], [1], [0], [0], [0, 0, 1, 0], [], []>} : vector<8x32xf32>, vector<32x32xf32>, vector<8x32xf32> -> vector<8x32xf32>
    %c0_16 = arith.constant 0 : index
    %c0_17 = arith.constant 0 : index
    %30 = vector.load %arg5[%c0_16, %c0_17] : memref<32x32xf32, #tpu.memory_space<vmem>>, vector<32x32xf32>
    %cst_18 = arith.constant dense<0.000000e+00> : vector<8x32xf32>
    %31 = tpu.matmul %25, %30, %cst_18 {dimension_numbers = #tpu.dot_dimension_numbers<[1], [1], [0], [0], [0, 0, 1, 0], [], []>} : vector<8x32xf32>, vector<32x32xf32>, vector<8x32xf32> -> vector<8x32xf32>
    %c0_19 = arith.constant 0 : index
    %c0_20 = arith.constant 0 : index
    %32 = vector.load %arg2[%c0_19, %c0_20] : memref<8x8xf32, #tpu.memory_space<vmem>>, vector<8x8xf32>
    %cst_21 = arith.constant 0.000000e+00 : f32
    %33 = vector.broadcast %cst_21 : f32 to vector<8x8xf32>
    %34 = arith.cmpf oeq, %32, %33 : vector<8x8xf32>
    %cst_22 = arith.constant 0xFF800000 : f32
    %35 = vector.broadcast %cst_22 : f32 to vector<8x8xf32>
    %36 = arith.select %34, %35, %32 : vector<8x8xi1>, vector<8x8xf32>
    %37 = tpu.iota {dimensions = array<i32: 1>} : vector<8x32xi32>
    %cst_23 = arith.constant 0.000000e+00 : f32
    %38 = vector.broadcast %cst_23 : f32 to vector<8x32xf32>
    %c0_i32 = arith.constant 0 : i32
    %39 = vector.broadcast %c0_i32 : i32 to vector<8x32xi32>
    %40 = arith.cmpi sge, %37, %39 : vector<8x32xi32>
    %c8_i32 = arith.constant 8 : i32
    %41 = vector.broadcast %c8_i32 : i32 to vector<8x32xi32>
    %42 = arith.cmpi slt, %37, %41 : vector<8x32xi32>
    %43 = arith.andi %40, %42 : vector<8x32xi1>
    %cst_24 = arith.constant 0.000000e+00 : f32
    %44 = vector.broadcast %cst_24 : f32 to vector<8x32xf32>
    %45 = arith.select %43, %27, %44 : vector<8x32xi1>, vector<8x32xf32>
    %cst_25 = arith.constant 0.000000e+00 : f32
    %46 = vector.broadcast %cst_25 : f32 to vector<8x32xf32>
    %47 = arith.select %43, %29, %46 : vector<8x32xi1>, vector<8x32xf32>
    %cst_26 = arith.constant 0.000000e+00 : f32
    %48 = vector.broadcast %cst_26 : f32 to vector<8x32xf32>
    %49 = arith.select %43, %31, %48 : vector<8x32xi1>, vector<8x32xf32>
    %cst_27 = arith.constant dense<0.000000e+00> : vector<8x8xf32>
    %50 = tpu.matmul %45, %47, %cst_27 {dimension_numbers = #tpu.dot_dimension_numbers<[1], [1], [0], [0], [0, 0, 1, 0], [], []>} : vector<8x32xf32>, vector<8x32xf32>, vector<8x8xf32> -> vector<8x8xf32>
    %cst_28 = arith.constant 0.353553385 : f32
    %51 = vector.broadcast %cst_28 : f32 to vector<8x8xf32>
    %52 = arith.mulf %50, %51 : vector<8x8xf32>
    %cst_29 = arith.constant dense<0.000000e+00> : vector<8x8xf32>
    %53 = tpu.matmul %52, %36, %cst_29 {dimension_numbers = #tpu.dot_dimension_numbers<[1], [0], [0], [1], [0, 0, 1, 1], [], []>} : vector<8x8xf32>, vector<8x8xf32>, vector<8x8xf32> -> vector<8x8xf32>
    %cst_30 = arith.constant dense<0xFF800000> : vector<8xf32>
    %54 = vector.multi_reduction <maximumf>, %53, %cst_30 [0] : vector<8x8xf32> to vector<8xf32>
    %55 = vector.shape_cast %54 : vector<8xf32> to vector<1x8xf32>
    %56 = vector.broadcast %55 : vector<1x8xf32> to vector<8x8xf32>
    %57 = arith.subf %53, %56 : vector<8x8xf32>
    %58 = math.exp %57 : vector<8x8xf32>
    %cst_31 = arith.constant dense<0.000000e+00> : vector<8xf32>
    %59 = vector.multi_reduction <add>, %58, %cst_31 [0] : vector<8x8xf32> to vector<8xf32>
    %60 = vector.shape_cast %59 : vector<8xf32> to vector<1x8xf32>
    %61 = vector.broadcast %60 : vector<1x8xf32> to vector<8x8xf32>
    %62 = arith.divf %58, %61 : vector<8x8xf32>
    %cst_32 = arith.constant dense<0.000000e+00> : vector<8x32xf32>
    %63 = tpu.matmul %62, %49, %cst_32 {dimension_numbers = #tpu.dot_dimension_numbers<[1], [0], [0], [1], [0, 0, 1, 1], [], []>} : vector<8x8xf32>, vector<8x32xf32>, vector<8x32xf32> -> vector<8x32xf32>
    %64 = arith.addf %38, %63 : vector<8x32xf32>
    %c8_i32_33 = arith.constant 8 : i32
    %65 = vector.broadcast %c8_i32_33 : i32 to vector<8x32xi32>
    %66 = arith.cmpi sge, %37, %65 : vector<8x32xi32>
    %c16_i32 = arith.constant 16 : i32
    %67 = vector.broadcast %c16_i32 : i32 to vector<8x32xi32>
    %68 = arith.cmpi slt, %37, %67 : vector<8x32xi32>
    %69 = arith.andi %66, %68 : vector<8x32xi1>
    %cst_34 = arith.constant 0.000000e+00 : f32
    %70 = vector.broadcast %cst_34 : f32 to vector<8x32xf32>
    %71 = arith.select %69, %27, %70 : vector<8x32xi1>, vector<8x32xf32>
    %cst_35 = arith.constant 0.000000e+00 : f32
    %72 = vector.broadcast %cst_35 : f32 to vector<8x32xf32>
    %73 = arith.select %69, %29, %72 : vector<8x32xi1>, vector<8x32xf32>
    %cst_36 = arith.constant 0.000000e+00 : f32
    %74 = vector.broadcast %cst_36 : f32 to vector<8x32xf32>
    %75 = arith.select %69, %31, %74 : vector<8x32xi1>, vector<8x32xf32>
    %cst_37 = arith.constant dense<0.000000e+00> : vector<8x8xf32>
    %76 = tpu.matmul %71, %73, %cst_37 {dimension_numbers = #tpu.dot_dimension_numbers<[1], [1], [0], [0], [0, 0, 1, 0], [], []>} : vector<8x32xf32>, vector<8x32xf32>, vector<8x8xf32> -> vector<8x8xf32>
    %cst_38 = arith.constant 0.353553385 : f32
    %77 = vector.broadcast %cst_38 : f32 to vector<8x8xf32>
    %78 = arith.mulf %76, %77 : vector<8x8xf32>
    %cst_39 = arith.constant dense<0.000000e+00> : vector<8x8xf32>
    %79 = tpu.matmul %78, %36, %cst_39 {dimension_numbers = #tpu.dot_dimension_numbers<[1], [0], [0], [1], [0, 0, 1, 1], [], []>} : vector<8x8xf32>, vector<8x8xf32>, vector<8x8xf32> -> vector<8x8xf32>
    %cst_40 = arith.constant dense<0xFF800000> : vector<8xf32>
    %80 = vector.multi_reduction <maximumf>, %79, %cst_40 [0] : vector<8x8xf32> to vector<8xf32>
    %81 = vector.shape_cast %80 : vector<8xf32> to vector<1x8xf32>
    %82 = vector.broadcast %81 : vector<1x8xf32> to vector<8x8xf32>
    %83 = arith.subf %79, %82 : vector<8x8xf32>
    %84 = math.exp %83 : vector<8x8xf32>
    %cst_41 = arith.constant dense<0.000000e+00> : vector<8xf32>
    %85 = vector.multi_reduction <add>, %84, %cst_41 [0] : vector<8x8xf32> to vector<8xf32>
    %86 = vector.shape_cast %85 : vector<8xf32> to vector<1x8xf32>
    %87 = vector.broadcast %86 : vector<1x8xf32> to vector<8x8xf32>
    %88 = arith.divf %84, %87 : vector<8x8xf32>
    %cst_42 = arith.constant dense<0.000000e+00> : vector<8x32xf32>
    %89 = tpu.matmul %88, %75, %cst_42 {dimension_numbers = #tpu.dot_dimension_numbers<[1], [0], [0], [1], [0, 0, 1, 1], [], []>} : vector<8x8xf32>, vector<8x32xf32>, vector<8x32xf32> -> vector<8x32xf32>
    %90 = arith.addf %64, %89 : vector<8x32xf32>
    %c16_i32_43 = arith.constant 16 : i32
    %91 = vector.broadcast %c16_i32_43 : i32 to vector<8x32xi32>
    %92 = arith.cmpi sge, %37, %91 : vector<8x32xi32>
    %c24_i32 = arith.constant 24 : i32
    %93 = vector.broadcast %c24_i32 : i32 to vector<8x32xi32>
    %94 = arith.cmpi slt, %37, %93 : vector<8x32xi32>
    %95 = arith.andi %92, %94 : vector<8x32xi1>
    %cst_44 = arith.constant 0.000000e+00 : f32
    %96 = vector.broadcast %cst_44 : f32 to vector<8x32xf32>
    %97 = arith.select %95, %27, %96 : vector<8x32xi1>, vector<8x32xf32>
    %cst_45 = arith.constant 0.000000e+00 : f32
    %98 = vector.broadcast %cst_45 : f32 to vector<8x32xf32>
    %99 = arith.select %95, %29, %98 : vector<8x32xi1>, vector<8x32xf32>
    %cst_46 = arith.constant 0.000000e+00 : f32
    %100 = vector.broadcast %cst_46 : f32 to vector<8x32xf32>
    %101 = arith.select %95, %31, %100 : vector<8x32xi1>, vector<8x32xf32>
    %cst_47 = arith.constant dense<0.000000e+00> : vector<8x8xf32>
    %102 = tpu.matmul %97, %99, %cst_47 {dimension_numbers = #tpu.dot_dimension_numbers<[1], [1], [0], [0], [0, 0, 1, 0], [], []>} : vector<8x32xf32>, vector<8x32xf32>, vector<8x8xf32> -> vector<8x8xf32>
    %cst_48 = arith.constant 0.353553385 : f32
    %103 = vector.broadcast %cst_48 : f32 to vector<8x8xf32>
    %104 = arith.mulf %102, %103 : vector<8x8xf32>
    %cst_49 = arith.constant dense<0.000000e+00> : vector<8x8xf32>
    %105 = tpu.matmul %104, %36, %cst_49 {dimension_numbers = #tpu.dot_dimension_numbers<[1], [0], [0], [1], [0, 0, 1, 1], [], []>} : vector<8x8xf32>, vector<8x8xf32>, vector<8x8xf32> -> vector<8x8xf32>
    %cst_50 = arith.constant dense<0xFF800000> : vector<8xf32>
    %106 = vector.multi_reduction <maximumf>, %105, %cst_50 [0] : vector<8x8xf32> to vector<8xf32>
    %107 = vector.shape_cast %106 : vector<8xf32> to vector<1x8xf32>
    %108 = vector.broadcast %107 : vector<1x8xf32> to vector<8x8xf32>
    %109 = arith.subf %105, %108 : vector<8x8xf32>
    %110 = math.exp %109 : vector<8x8xf32>
    %cst_51 = arith.constant dense<0.000000e+00> : vector<8xf32>
    %111 = vector.multi_reduction <add>, %110, %cst_51 [0] : vector<8x8xf32> to vector<8xf32>
    %112 = vector.shape_cast %111 : vector<8xf32> to vector<1x8xf32>
    %113 = vector.broadcast %112 : vector<1x8xf32> to vector<8x8xf32>
    %114 = arith.divf %110, %113 : vector<8x8xf32>
    %cst_52 = arith.constant dense<0.000000e+00> : vector<8x32xf32>
    %115 = tpu.matmul %114, %101, %cst_52 {dimension_numbers = #tpu.dot_dimension_numbers<[1], [0], [0], [1], [0, 0, 1, 1], [], []>} : vector<8x8xf32>, vector<8x32xf32>, vector<8x32xf32> -> vector<8x32xf32>
    %116 = arith.addf %90, %115 : vector<8x32xf32>
    %c24_i32_53 = arith.constant 24 : i32
    %117 = vector.broadcast %c24_i32_53 : i32 to vector<8x32xi32>
    %118 = arith.cmpi sge, %37, %117 : vector<8x32xi32>
    %c32_i32 = arith.constant 32 : i32
    %119 = vector.broadcast %c32_i32 : i32 to vector<8x32xi32>
    %120 = arith.cmpi slt, %37, %119 : vector<8x32xi32>
    %121 = arith.andi %118, %120 : vector<8x32xi1>
    %cst_54 = arith.constant 0.000000e+00 : f32
    %122 = vector.broadcast %cst_54 : f32 to vector<8x32xf32>
    %123 = arith.select %121, %27, %122 : vector<8x32xi1>, vector<8x32xf32>
    %cst_55 = arith.constant 0.000000e+00 : f32
    %124 = vector.broadcast %cst_55 : f32 to vector<8x32xf32>
    %125 = arith.select %121, %29, %124 : vector<8x32xi1>, vector<8x32xf32>
    %cst_56 = arith.constant 0.000000e+00 : f32
    %126 = vector.broadcast %cst_56 : f32 to vector<8x32xf32>
    %127 = arith.select %121, %31, %126 : vector<8x32xi1>, vector<8x32xf32>
    %cst_57 = arith.constant dense<0.000000e+00> : vector<8x8xf32>
    %128 = tpu.matmul %123, %125, %cst_57 {dimension_numbers = #tpu.dot_dimension_numbers<[1], [1], [0], [0], [0, 0, 1, 0], [], []>} : vector<8x32xf32>, vector<8x32xf32>, vector<8x8xf32> -> vector<8x8xf32>
    %cst_58 = arith.constant 0.353553385 : f32
    %129 = vector.broadcast %cst_58 : f32 to vector<8x8xf32>
    %130 = arith.mulf %128, %129 : vector<8x8xf32>
    %cst_59 = arith.constant dense<0.000000e+00> : vector<8x8xf32>
    %131 = tpu.matmul %130, %36, %cst_59 {dimension_numbers = #tpu.dot_dimension_numbers<[1], [0], [0], [1], [0, 0, 1, 1], [], []>} : vector<8x8xf32>, vector<8x8xf32>, vector<8x8xf32> -> vector<8x8xf32>
    %cst_60 = arith.constant dense<0xFF800000> : vector<8xf32>
    %132 = vector.multi_reduction <maximumf>, %131, %cst_60 [0] : vector<8x8xf32> to vector<8xf32>
    %133 = vector.shape_cast %132 : vector<8xf32> to vector<1x8xf32>
    %134 = vector.broadcast %133 : vector<1x8xf32> to vector<8x8xf32>
    %135 = arith.subf %131, %134 : vector<8x8xf32>
    %136 = math.exp %135 : vector<8x8xf32>
    %cst_61 = arith.constant dense<0.000000e+00> : vector<8xf32>
    %137 = vector.multi_reduction <add>, %136, %cst_61 [0] : vector<8x8xf32> to vector<8xf32>
    %138 = vector.shape_cast %137 : vector<8xf32> to vector<1x8xf32>
    %139 = vector.broadcast %138 : vector<1x8xf32> to vector<8x8xf32>
    %140 = arith.divf %136, %139 : vector<8x8xf32>
    %cst_62 = arith.constant dense<0.000000e+00> : vector<8x32xf32>
    %141 = tpu.matmul %140, %127, %cst_62 {dimension_numbers = #tpu.dot_dimension_numbers<[1], [0], [0], [1], [0, 0, 1, 1], [], []>} : vector<8x8xf32>, vector<8x32xf32>, vector<8x32xf32> -> vector<8x32xf32>
    %142 = arith.addf %116, %141 : vector<8x32xf32>
    %143 = arith.addf %1, %142 : vector<8x32xf32>
    %c0_63 = arith.constant 0 : index
    %c0_64 = arith.constant 0 : index
    %144 = vector.load %arg10[%c0_63, %c0_64] : memref<1x32xf32, #tpu.memory_space<vmem>>, vector<1x32xf32>
    %c0_65 = arith.constant 0 : index
    %c0_66 = arith.constant 0 : index
    %145 = vector.load %arg11[%c0_65, %c0_66] : memref<1x32xf32, #tpu.memory_space<vmem>>, vector<1x32xf32>
    %cst_67 = arith.constant dense<0.000000e+00> : vector<8xf32>
    %146 = vector.multi_reduction <add>, %143, %cst_67 [1] : vector<8x32xf32> to vector<8xf32>
    %147 = vector.shape_cast %146 : vector<8xf32> to vector<8x1xf32>
    %cst_68 = arith.constant 3.200000e+01 : f32
    %148 = vector.broadcast %cst_68 : f32 to vector<8x1xf32>
    %149 = arith.divf %147, %148 : vector<8x1xf32>
    %150 = vector.broadcast %149 : vector<8x1xf32> to vector<8x32xf32>
    %151 = arith.subf %143, %150 : vector<8x32xf32>
    %152 = arith.mulf %151, %151 : vector<8x32xf32>
    %cst_69 = arith.constant dense<0.000000e+00> : vector<8xf32>
    %153 = vector.multi_reduction <add>, %152, %cst_69 [1] : vector<8x32xf32> to vector<8xf32>
    %154 = vector.shape_cast %153 : vector<8xf32> to vector<8x1xf32>
    %cst_70 = arith.constant 3.200000e+01 : f32
    %155 = vector.broadcast %cst_70 : f32 to vector<8x1xf32>
    %156 = arith.divf %154, %155 : vector<8x1xf32>
    %157 = vector.broadcast %149 : vector<8x1xf32> to vector<8x32xf32>
    %158 = arith.subf %143, %157 : vector<8x32xf32>
    %cst_71 = arith.constant 9.99999974E-6 : f32
    %159 = vector.broadcast %cst_71 : f32 to vector<8x1xf32>
    %160 = arith.addf %156, %159 : vector<8x1xf32>
    %161 = math.rsqrt %160 : vector<8x1xf32>
    %162 = vector.broadcast %161 : vector<8x1xf32> to vector<8x32xf32>
    %163 = arith.mulf %158, %162 : vector<8x32xf32>
    %164 = vector.broadcast %144 : vector<1x32xf32> to vector<8x32xf32>
    %165 = arith.mulf %163, %164 : vector<8x32xf32>
    %166 = vector.broadcast %145 : vector<1x32xf32> to vector<8x32xf32>
    %167 = arith.addf %165, %166 : vector<8x32xf32>
    %c0_72 = arith.constant 0 : index
    %c0_73 = arith.constant 0 : index
    %168 = vector.load %arg6[%c0_72, %c0_73] : memref<32x32xf32, #tpu.memory_space<vmem>>, vector<32x32xf32>
    %cst_74 = arith.constant dense<0.000000e+00> : vector<8x32xf32>
    %169 = tpu.matmul %167, %168, %cst_74 {dimension_numbers = #tpu.dot_dimension_numbers<[1], [1], [0], [0], [0, 0, 1, 0], [], []>} : vector<8x32xf32>, vector<32x32xf32>, vector<8x32xf32> -> vector<8x32xf32>
    %cst_75 = arith.constant 0.000000e+00 : f32
    %170 = vector.broadcast %cst_75 : f32 to vector<8x32xf32>
    %171 = arith.maximumf %169, %170 : vector<8x32xf32>
    %c0_76 = arith.constant 0 : index
    %c0_77 = arith.constant 0 : index
    %172 = vector.load %arg7[%c0_76, %c0_77] : memref<32x32xf32, #tpu.memory_space<vmem>>, vector<32x32xf32>
    %cst_78 = arith.constant dense<0.000000e+00> : vector<8x32xf32>
    %173 = tpu.matmul %171, %172, %cst_78 {dimension_numbers = #tpu.dot_dimension_numbers<[1], [1], [0], [0], [0, 0, 1, 0], [], []>} : vector<8x32xf32>, vector<32x32xf32>, vector<8x32xf32> -> vector<8x32xf32>
    %174 = arith.addf %143, %173 : vector<8x32xf32>
    %c0_79 = arith.constant 0 : index
    %c0_80 = arith.constant 0 : index
    %c0_81 = arith.constant 0 : index
    %175 = vector.load %arg12[%c0_79, %c0_80, %c0_81] : memref<1x8x32xf32, #tpu.memory_space<vmem>>, vector<1x8x32xf32>
    %176 = vector.shape_cast %175 : vector<1x8x32xf32> to vector<8x32xf32>
    %177 = vector.shape_cast %174 : vector<8x32xf32> to vector<1x8x32xf32>
    tpu.vector_store %arg12[%c0_79, %c0_80, %c0_81], %177 {strides = array<i32>} : memref<1x8x32xf32, #tpu.memory_space<vmem>>, vector<1x8x32xf32>,
    return
  }
  func.func @transform_0(%arg0: i32) -> (i32, i32, i32) {
    %c0_i32 = arith.constant 0 : i32
    %c0_i32_0 = arith.constant 0 : i32
    %c0_i32_1 = arith.constant 0 : i32
    return %arg0, %c0_i32, %c0_i32_0 : i32, i32, i32
  }
  func.func @transform_1(%arg0: i32) -> (i32, i32) {
    %c0_i32 = arith.constant 0 : i32
    %c0_i32_0 = arith.constant 0 : i32
    %c0_i32_1 = arith.constant 0 : i32
    return %c0_i32, %c0_i32_0 : i32, i32
  }
  func.func @transform_2(%arg0: i32) -> (i32, i32) {
    %c0_i32 = arith.constant 0 : i32
    %c0_i32_0 = arith.constant 0 : i32
    %c0_i32_1 = arith.constant 0 : i32
    return %c0_i32, %c0_i32_0 : i32, i32
  }
  func.func @transform_3(%arg0: i32) -> (i32, i32) {
    %c0_i32 = arith.constant 0 : i32
    %c0_i32_0 = arith.constant 0 : i32
    %c0_i32_1 = arith.constant 0 : i32
    return %c0_i32, %c0_i32_0 : i32, i32
  }
  func.func @transform_4(%arg0: i32) -> (i32, i32) {
    %c0_i32 = arith.constant 0 : i32
    %c0_i32_0 = arith.constant 0 : i32
    %c0_i32_1 = arith.constant 0 : i32
    return %c0_i32, %c0_i32_0 : i32, i32
  }
  func.func @transform_5(%arg0: i32) -> (i32, i32) {
    %c0_i32 = arith.constant 0 : i32
    %c0_i32_0 = arith.constant 0 : i32
    %c0_i32_1 = arith.constant 0 : i32
    return %c0_i32, %c0_i32_0 : i32, i32
  }
  func.func @transform_6(%arg0: i32) -> (i32, i32) {
    %c0_i32 = arith.constant 0 : i32
    %c0_i32_0 = arith.constant 0 : i32
    %c0_i32_1 = arith.constant 0 : i32
    return %c0_i32, %c0_i32_0 : i32, i32
  }
  func.func @transform_7(%arg0: i32) -> (i32, i32) {
    %c0_i32 = arith.constant 0 : i32
    %c0_i32_0 = arith.constant 0 : i32
    %c0_i32_1 = arith.constant 0 : i32
    return %c0_i32, %c0_i32_0 : i32, i32
  }
  func.func @transform_8(%arg0: i32) -> (i32, i32) {
    %c0_i32 = arith.constant 0 : i32
    %c0_i32_0 = arith.constant 0 : i32
    %c0_i32_1 = arith.constant 0 : i32
    return %c0_i32, %c0_i32_0 : i32, i32
  }
  func.func @transform_9(%arg0: i32) -> (i32, i32) {
    %c0_i32 = arith.constant 0 : i32
    %c0_i32_0 = arith.constant 0 : i32
    %c0_i32_1 = arith.constant 0 : i32
    return %c0_i32, %c0_i32_0 : i32, i32
  }
  func.func @transform_10(%arg0: i32) -> (i32, i32) {
    %c0_i32 = arith.constant 0 : i32
    %c0_i32_0 = arith.constant 0 : i32
    %c0_i32_1 = arith.constant 0 : i32
    return %c0_i32, %c0_i32_0 : i32, i32
  }
  func.func @transform_11(%arg0: i32) -> (i32, i32, i32) {
    %c0_i32 = arith.constant 0 : i32
    %c0_i32_0 = arith.constant 0 : i32
    %c0_i32_1 = arith.constant 0 : i32
    return %arg0, %c0_i32, %c0_i32_0 : i32, i32, i32
  }
}

</mosaic_0001>

<bundles_post_ra>
// kernel: bigram_attn_forward.5
= control target key start
LH: loop header
LB: loop body
LE: loop exit
PB: predicated region body
PF: predicated region fallthrough
CT: control target
= control target key end

     0   :  { %v157_v1 = vmov 0.0   ;;  %vm158_vm0 = vmmov 0   ;;  %s206_s0 = inlined_call_operand.vmem [shape: bf16[16,32], index: 0, kind: input, shape index: {}]   ;;  %s207_s1 = inlined_call_operand.vmem [shape: bf16[32,128], index: 1, kind: input, shape index: {}]   ;;  %s208_s2 = inlined_call_operand.vmem [shape: f32[1,128], index: 2, kind: input, shape index: {}]   ;;  %s209_s3 = inlined_call_operand.hbm [shape: f32[16,128], index: 3, kind: output, shape index: {}]  }
   0x1   :  { %v130_v0 = vld [vmem:[%s207_s1] sm:$0xff]   ;;  %117 = vmatprep.subr.bf16.mxu0 %v157_v1  ;;  %v131_v2 = vld [vmem:[%s207_s1 + $0x8] sm:$0xff]   ;;  %121 = vmatprep.mubr.msk.bf16.mxu0 %vm158_vm0, %v157_v1 }
   0x2   :  { %118 = vmatpush3.bf16.msra.mxu0 %v130_v0 }
   0x3   :  { %119 = vmatprep.subr.bf16.mxu0 %v157_v1 }
   0x4   :  { %8 = vsyncpa [#allocation3], 0  ;;  %v132_v3 = vld [vmem:[%s206_s0] sm:$0xff]   ;;  %vm46_vm1 = vcmask 261120   ;;  %s159_s20 = smov [#allocation2]  }
   0x5   :  { %v109_v4 = vld [vmem:[%s208_s2] ss:$0 sm:$0xff]  ;;  %s98_s21 = sshll.u32 %s159_s20, 4  ;;  %s99_s21 = int_to_ptr.vmem [resolvable:$true] %s98_s21 }
   0x6   :  { %120 = vmatpush3.bf16.msra.mxu0 %v131_v2  ;;  %s133_s1 = scalar_lea.vmem %s99_s21, 256  ;;  %p138_p1 = scmp.lt.s32.totalorder %s99_s21, %s99_s21 }
   0x7   :  { %p134_p0 = scmp.ne.s32.totalorder %s99_s21, %s133_s1  ;;  %p139_p2 = scmp.lt.s32.totalorder %s133_s1, %s133_s1 }
   0x9   :  { %122 = vmatmul.mubr.msk.bf16.vlgmr.msra.gmra.mrb[0].mxu0 %vm46_vm1, %v132_v3  ;;  %p140_p3 = por %p139_p2, %p138_p1 }
   0xb   :  { %p141_p4 = pnand %p140_p3, %p134_p0 }
  0xdc   :  { %v84_v5 = vpop.f32.mrb[0].mxu0 }
  0xdd   :  { %v85_v6 = vadd.f32 %v109_v4, %v84_v5  ;;  %v123_v7 = vpop.f32.mrb[1].mxu0 }
  0xde   :  { %v87_v8 = vpop.f32.mrb[2].mxu0 }
  0xdf   :  { %91 = vst [vmem:[#allocation2] sm:$0xff] %v85_v6  ;;  %v88_v9 = vadd.f32 %v109_v4, %v87_v8  ;;  %v124_v10 = vpop.f32.mrb[3].mxu0 }
  0xe1   :  { %92 = vst [vmem:[#allocation2 + $0x8] sm:$0xff] %v88_v9 }
  0xe2   :  { %144 = shalt.err (!%p141_p4)
}
  0xe3   :  { %s145_s22 = scalar_lea.hbm %s209_s3, 256 }
  0xe4   :  { %p146_p5 = scmp.ne.s32.totalorder %s209_s3, %s145_s22  ;;  %p149_p6 = scmp.lt.u32.totalorder %s145_s22, %s209_s3 }
  0xe6   :  { %p151_p7 = pnand %p149_p6, %p146_p5 }
  0xe8   :  { %154 = shalt.err (!%p151_p7)
}
  0xe9   :  { %s160_s27 = smov 128   ;;  %s161_s28 = smov 8  }
  0xea   :  { %104 = dma.vmem_to_hbm [thread:$0]  %s99_s21, 256, %s209_s3, [#allocation3], %s160_s27, %s160_s27, %s161_s28  }
  0xeb   :  { %155 = dma.done.wait [#allocation3], 256  }
  0xec   :  { %156 = vsyncadd [#allocation3], 4294967040 }
  0xed   :  { %108 = vsyncpa [#allocation3], 1 }

// kernel: bigram_attn_forward.3
= control target key start
LH: loop header
LB: loop body
LE: loop exit
PB: predicated region body
PF: predicated region fallthrough
CT: control target
= control target key end

     0   :  { %s2303_s17 = smov 0   ;;  %s2596_s0 = inlined_call_operand.vmem [shape: f32[2,8,32], index: 0, kind: input, shape index: {}]   ;;  %s2597_s1 = inlined_call_operand.vmem [shape: f32[8,8], index: 1, kind: input, shape index: {}]   ;;  %s2598_s2 = inlined_call_operand.vmem [shape: f32[32,32], index: 2, kind: input, shape index: {}]   ;;  %s2599_s3 = inlined_call_operand.vmem [shape: f32[32,32], index: 3, kind: input, shape index: {}]   ;;  %s2600_s4 = inlined_call_operand.vmem [shape: f32[32,32], index: 4, kind: input, shape index: {}]   ;;  %s2601_s5 = inlined_call_operand.vmem [shape: f32[32,32], index: 5, kind: input, shape index: {}]   ;;  %s2602_s6 = inlined_call_operand.vmem [shape: f32[32,32], index: 6, kind: input, shape index: {}]   ;;  %s2603_s7 = inlined_call_operand.vmem [shape: f32[1,32], index: 7, kind: input, shape index: {}]   ;;  %s2604_s8 = inlined_call_operand.vmem [shape: f32[1,32], index: 8, kind: input, shape index: {}]   ;;  %s2605_s9 = inlined_call_operand.vmem [shape: f32[1,32], index: 9, kind: input, shape index: {}]   ;;  %s2606_s10 = inlined_call_operand.vmem [shape: f32[1,32], index: 10, kind: input, shape index: {}]   ;;  %s2607_s11 = inlined_call_operand.vmem [shape: f32[2,8,32], index: 11, kind: output, shape index: {}]  }
   0x1 LB: > { %s1939_s18 = sadd.s32 4294967295, %s2238_s17   ;;  %p1943_p0 = scmp.ge.s32.totalorder %s2238_s17, 1  ;;  %s2238_s17 = sphi %s2303_s17, %s21_s17  }
   0x2   : > { %p336_p1 = scmp.lt.s32.totalorder %s2238_s17, 3 }
   0x4   : > { %p337_p2 = pnand %p1943_p0, %p336_p1 }
   0x5   : > { %p374_p3 = scmp.lt.s32.totalorder (!%p337_p2), %s1939_s18, 1  ;;  %vm385_vm0 = vcmask (!%p337_p2), 261120   ;;  %v414_v7 = vld [vmem:[%s2598_s2] sm:$0xff] (!%p337_p2)  ;;  %v415_v8 = vld [vmem:[%s2598_s2 + $0x8] sm:$0xff] (!%p337_p2)  ;;  %v2240_v12 = vmov (!%p337_p2), 0.0|0.0   ;;  %vm2241_vm2 = vmmov (!%p337_p2), 0   ;;  %v678_v37 = vlaneseq (!%p337_p2) }
   0x6   : > { %340 = sbr.rel (%p337_p2) target bundleno = 2956 (0xb8c), region = 64  ;;  %v2162_v9 = vpack.c.bf16 (!%p337_p2), %v415_v8, %v414_v7  ;;  %v503_v10 = vld [vmem:[%s2599_s3] sm:$0xff] (!%p337_p2)  ;;  %v504_v11 = vld [vmem:[%s2599_s3 + $0x8] sm:$0xff] (!%p337_p2)  ;;  %2161 = vmatprep.subr.bf16.mxu0 (!%p337_p2), %v2240_v12  ;;  %vm2340_vm1 = vmpackc.low (!%p337_p2), %vm385_vm0, %vm385_vm0  ;;  %2169 = vmatprep.subr.bf16.mxu1 (!%p337_p2), %v2240_v12  ;;  %v2242_v15 = vmov (!%p337_p2), 0.0   ;;  %vm763_vm14 = vcmask (!%p337_p2), 64512  }
   0x7   : > { %v2170_v14 = vpack.c.bf16 (!%p337_p2), %v504_v11, %v503_v10  ;;  %2054 = vmatprep.mubr.msk.f32.mxu0 (!%p337_p2), %vm2241_vm2, %v2242_v15  ;;  %v416_v16 = vld [vmem:[%s2598_s2 + $0x10] sm:$0xff] (!%p337_p2)  ;;  %v417_v17 = vld [vmem:[%s2598_s2 + $0x18] sm:$0xff] (!%p337_p2)  ;;  %2065 = vmatprep.mubr.msk.f32.mxu1 (!%p337_p2), %vm2241_vm2, %v2242_v15  ;;  %v1946_v26 = vld [vmem:[%s2603_s7] ss:$0 sm:$0xff] (!%p337_p2)  ;;  %v679_v38 = vand.u32 (!%p337_p2), 127, %v678_v37 }
   0x8   : > { %2164 = vmatpush3.bf16.xpose.msk.msra.mxu0 (!%p337_p2), %vm2340_vm1, %v2162_v9  ;;  %v505_v18 = vld [vmem:[%s2599_s3 + $0x10] sm:$0xff] (!%p337_p2)  ;;  %v506_v19 = vld [vmem:[%s2599_s3 + $0x18] sm:$0xff] (!%p337_p2)  ;;  %v2166_v20 = vpack.c.bf16 (!%p337_p2), %v417_v17, %v416_v16  ;;  %v589_v28 = vld [vmem:[%s2600_s4] sm:$0xff] (!%p337_p2) }
   0x9   : > { %2172 = vmatpush3.bf16.xpose.msk.msra.mxu1 (!%p337_p2), %vm2340_vm1, %v2170_v14  ;;  %2165 = vmatprep.subr.bf16.mxu0 (!%p337_p2), %v2240_v12  ;;  %v2174_v21 = vpack.c.bf16 (!%p337_p2), %v506_v19, %v505_v18  ;;  %v590_v29 = vld [vmem:[%s2600_s4 + $0x8] sm:$0xff] (!%p337_p2)  ;;  %v1947_v30 = vld [vmem:[%s2604_s8] ss:$0 sm:$0xff] (!%p337_p2)  ;;  %v591_v34 = vld [vmem:[%s2600_s4 + $0x10] sm:$0xff] (!%p337_p2)  ;;  %vm856_vm3 = vcmp.ge.s32.totalorder (!%p337_p2), %v679_v38, 8  ;;  %vm857_vm4 = vcmp.lt.s32.totalorder (!%p337_p2), %v679_v38, 16 }
   0xa   : > { %2173 = vmatprep.subr.bf16.mxu1 (!%p337_p2), %v2240_v12  ;;  %v2178_v32 = vpack.c.bf16 (!%p337_p2), %v590_v29, %v589_v28  ;;  %v592_v35 = vld [vmem:[%s2600_s4 + $0x18] sm:$0xff] (!%p337_p2)  ;;  %vm1177_vm5 = vcmp.ge.s32.totalorder (!%p337_p2), %v679_v38, 16  ;;  %vm1178_vm6 = vcmp.lt.s32.totalorder (!%p337_p2), %v679_v38, 24  ;;  %vm1426_vm7 = vcmp.ge.s32.totalorder (!%p337_p2), %v679_v38, 24  ;;  %vm2406_vm9 = vmand (!%p337_p2), %vm856_vm3, %vm857_vm4  ;;  %v675_v40 = vld [vmem:[%s2597_s1] sm:$0xff] (!%p337_p2) }
   0xb   : > { %v2182_v36 = vpack.c.bf16 (!%p337_p2), %v592_v35, %v591_v34  ;;  %vm1427_vm8 = vcmp.lt.s32.totalorder (!%p337_p2), %v679_v38, 32  ;;  %vm681_vm10 = vcmp.lt.s32.totalorder (!%p337_p2), %v679_v38, 8  ;;  %vm2413_vm11 = vmand (!%p337_p2), %vm1177_vm5, %vm1178_vm6  ;;  %vm676_vm13 = vcmp.eq.f32.partialorder (!%p337_p2), %v675_v40, 0.0 }
   0xc   : > { %vm2417_vm12 = vmand (!%p337_p2), %vm1426_vm7, %vm1427_vm8  ;;  %v2447_v54 = vsel (!%p337_p2), %vm676_vm13, -inf, %v675_v40 }
   0xd   : > { %s2617_s18 = smov (!%p374_p3, %s1939_s18), 1 }
   0xe   : > { %s1944_s19 = sshll.u32 %s2617_s18, 3 }
   0xf   : > { %s377_s22 = scalar_lea.vmem %s2596_s0, %s1944_s19  ;;  %s381_s27 = scalar_lea.vmem %s2607_s11, %s1944_s19 }
  0x10   : > { %v2319_v0 = vld [vmem:[%s377_s22] sm:$0xff]  ;;  %2168 = vmatpush3.bf16.xpose.msk.msra.mxu0 %vm2340_vm1, %v2166_v20 }
  0x11   : > { %v386_v1 = vsel %vm385_vm0, %v2319_v0, 0.0  ;;  %2176 = vmatpush3.bf16.xpose.msk.msra.mxu1 %vm2340_vm1, %v2174_v21  ;;  %2177 = vmatprep.subr.bf16.mxu0 %v2240_v12 }
  0x12   : > { %387 = vadd.xlane.f32.xlu0 %v386_v1  ;;  %2079 = vmatprep.subr.mxu1 %v2242_v15 }
  0x9f   : > { %v388_v2 = vpop.xlane.xlu0 %387 }
  0xa0   : > { %v390_v3 = vmul.f32 0.03125, %v388_v2 }
  0xa2   : > { %v391_v4 = vsub.f32 %v2319_v0, %v390_v3 }
  0xa4   : > { %v392_v5 = vmul.f32 %v391_v4, %v391_v4 }
  0xa6   : > { %v393_v6 = vsel %vm385_vm0, %v392_v5, 0.0 }
  0xa7   : > { %394 = vadd.xlane.f32.xlu0 %v393_v6 }
 0x134   : > { %v395_v22 = vpop.xlane.xlu0 %394 }
 0x135   : > { %v396_v23 = vmul.f32 0.03125, %v395_v22 }
 0x137   : > { %v397_v24 = vadd.f32 1e-05, %v396_v23 }
 0x139   : > { %2212 = vrsqrt.f32 %v397_v24 }
 0x143   : > { %v2213_v25 = vpop.eup %2212 }
 0x144   : > { %v399_v27 = vmul.f32 %v2213_v25, %v391_v4 }
 0x146   : > { %v406_v31 = vmul.f32 %v1946_v26, %v399_v27 }
 0x148   : > { %v413_v33 = vadd.f32 %v1947_v30, %v406_v31 }
 0x14a   : > { %2055 = vmatmul.mubr.msk.f32.vlgmr.msra.gmra.mrb[0].mxu0 %vm385_vm0, %v413_v33  ;;  %2066 = vmatmul.mubr.msk.f32.vlgmr.msra.gmra.mrb[0].mxu1 %vm385_vm0, %v413_v33 }
 0x14b   : > { %2180 = vmatpush3.bf16.xpose.msk.msra.mxu0 %vm2340_vm1, %v2178_v32  ;;  %2076 = vmatprep.mubr.msk.f32.mxu0 %vm2241_vm2, %v2242_v15 }
 0x14c   : > { %2181 = vmatprep.subr.bf16.mxu0 %v2240_v12  ;;  %2081 = vmatprep.mubr.msk.f32.mxu1 %vm2241_vm2, %v2242_v15 }
 0x153   : > { %2184 = vmatpush3.bf16.xpose.msk.msra.mxu0 %vm2340_vm1, %v2182_v36 }
 0x154   : > { %2099 = vmatprep.subr.mxu0 %v2242_v15 }
 0x15a   : > { %2077 = vmatmul.mubr.msk.f32.vlgmr.msra.gmra.mrb[2].mxu0 %vm385_vm0, %v413_v33 }
 0x15b   : > { %2101 = vmatprep.mubr.msk.f32.mxu0 %vm2241_vm2, %v2242_v15 }
 0x21d   : > { %v2421_v43 = vpop.f32.mrb[0].mxu0  ;;  %v2423_v44 = vpop.f32.mrb[0].mxu1 }
 0x21e   : > { %v2056_v45 = vpop.f32.mrb[1].mxu0  ;;  %v2067_v46 = vpop.f32.mrb[1].mxu1  ;;  %v684_v47 = vsel %vm681_vm10, %v2423_v44, 0.0  ;;  %v860_v48 = vsel %vm2406_vm9, %v2423_v44, 0.0  ;;  %v859_v49 = vsel %vm2406_vm9, %v2421_v43, 0.0  ;;  %v1181_v50 = vsel %vm2413_vm11, %v2423_v44, 0.0 }
 0x21f   : > { %2080 = vmatpush3.xpose.msk.msra.mxu1 %vm385_vm0, %v684_v47  ;;  %v1180_v51 = vsel %vm2413_vm11, %v2421_v43, 0.0  ;;  %v1430_v52 = vsel %vm2417_vm12, %v2423_v44, 0.0  ;;  %v1429_v53 = vsel %vm2417_vm12, %v2421_v43, 0.0  ;;  %v683_v55 = vsel %vm681_vm10, %v2421_v43, 0.0 }
 0x220   : > { %2084 = vmatprep.subr.mxu1 %v2242_v15 }
 0x222   : > { %2082 = vmatmul.mubr.msk.f32.vlgmr.msra.gmra.mrb[2].mxu1 %vm385_vm0, %v683_v55 }
 0x223   : > { %2085 = vmatpush3.msra.mxu1 %v2447_v54  ;;  %2086 = vmatprep.mubr.msk.f32.mxu1 %vm2241_vm2, %v2242_v15 }
 0x224   : > { %2089 = vmatprep.subr.mxu1 %v2242_v15 }
 0x22d   : > { %v2456_v56 = vpop.f32.mrb[2].mxu0 }
 0x22e   : > { %v2078_v57 = vpop.f32.mrb[3].mxu0  ;;  %2100 = vmatpush3.msk.msra.mxu0 %vm2406_vm9, %v2456_v56 }
 0x22f   : > { %2109 = vmatprep.subr.mxu0 %v2242_v15 }
 0x2f5   : > { %v758_v58 = vpop.f32.mrb[2].mxu1 }
 0x2f6   : > { %v762_v59 = vmul.f32 0.35355338, %v758_v58  ;;  %v2083_v60 = vpop.f32.mrb[3].mxu1 }
 0x2f8   : > { %2087 = vmatmul.mubr.msk.f32.vlgmr.msra.gmra.mrb[4].mxu1 %vm763_vm14, %v762_v59 }
 0x2f9   : > { %2090 = vmatpush3.xpose.msk.msra.mxu1 %vm385_vm0, %v860_v48  ;;  %2091 = vmatprep.mubr.msk.f32.mxu1 %vm2241_vm2, %v2242_v15 }
 0x2fa   : > { %2094 = vmatprep.subr.mxu1 %v2242_v15 }
 0x2fc   : > { %2092 = vmatmul.mubr.msk.f32.vlgmr.msra.gmra.mrb[6].mxu1 %vm385_vm0, %v859_v49 }
 0x2fd   : > { %2095 = vmatpush3.msra.mxu1 %v2447_v54  ;;  %2096 = vmatprep.mubr.msk.f32.mxu1 %vm2241_vm2, %v2242_v15 }
 0x2fe   : > { %2104 = vmatprep.subr.mxu1 %v2242_v15 }
 0x3cb   : > { %v833_v61 = vpop.f32.mrb[4].mxu1 }
 0x3cc   : > { %v837_v62 = vsel %vm763_vm14, %v833_v61, -inf  ;;  %v2088_v63 = vpop.f32.mrb[5].mxu1 }
 0x3cd   : > { %v838_v1 = vrot.slane %v837_v62, 4 }
 0x3cf   : > { %v839_v2 = vmax.f32 %v837_v62, %v838_v1  ;;  %v934_v3 = vpop.f32.mrb[6].mxu1 }
 0x3d0   : > { %v938_v4 = vmul.f32 0.35355338, %v934_v3  ;;  %v2093_v5 = vpop.f32.mrb[7].mxu1 }
 0x3d1   : > { %v840_v6 = vrot.slane %v839_v2, 2 }
 0x3d2   : > { %2097 = vmatmul.mubr.msk.f32.vlgmr.msra.gmra.mrb[8].mxu1 %vm763_vm14, %v938_v4 }
 0x3d3   : > { %v841_v7 = vmax.f32 %v839_v2, %v840_v6  ;;  %2105 = vmatpush3.msk.msra.mxu1 %vm681_vm10, %v2456_v56  ;;  %2106 = vmatprep.mubr.msk.f32.mxu1 %vm2241_vm2, %v2242_v15 }
 0x3d4   : > { %2114 = vmatprep.subr.mxu1 %v2242_v15 }
 0x3d5   : > { %v842_v8 = vrot.slane %v841_v7, 1 }
 0x3d7   : > { %v843_v9 = vmax.f32 %v841_v7, %v842_v8 }
 0x3d9   : > { %v844_v10 = vsub.f32 %v833_v61, %v843_v9 }
 0x3db   : > { %v845_v11 = vmul.f32 1.442695, %v844_v10 }
 0x3dd   : > { %2214 = vpow2.f32 %v845_v11 }
 0x3e7   : > { %v2215_v14 = vpop.eup %2214 }
 0x3e8   : > { %v847_v16 = vsel %vm763_vm14, %v2215_v14, 0.0 }
 0x3e9   : > { %v848_v17 = vrot.slane %v847_v16, 4 }
 0x3eb   : > { %v849_v18 = vadd.f32 %v848_v17, %v847_v16 }
 0x3ed   : > { %v850_v19 = vrot.slane %v849_v18, 2 }
 0x3ef   : > { %v851_v20 = vadd.f32 %v850_v19, %v849_v18 }
 0x3f1   : > { %v852_v21 = vrot.slane %v851_v20, 1 }
 0x3f3   : > { %v853_v22 = vadd.f32 %v852_v21, %v851_v20 }
 0x3f5   : > { %2216 = vrcp.f32 %v853_v22 }
 0x3ff   : > { %v2217_v23 = vpop.eup %2216 }
 0x400   : > { %v855_v24 = vmul.f32 %v2217_v23, %v2215_v14 }
 0x402   : > { %2107 = vmatmul.mubr.msk.f32.vlgmr.msra.gmra.mrb[10].mxu1 %vm763_vm14, %v855_v24 }
 0x403   : > { %2115 = vmatpush3.msra.mxu1 %v2447_v54  ;;  %2116 = vmatprep.mubr.msk.f32.mxu1 %vm2241_vm2, %v2242_v15 }
 0x404   : > { %2124 = vmatprep.subr.mxu1 %v2242_v15 }
 0x4a5   : > { %v1008_v25 = vpop.f32.mrb[8].mxu1 }
 0x4a6   : > { %v1012_v26 = vsel %vm763_vm14, %v1008_v25, -inf  ;;  %v2098_v27 = vpop.f32.mrb[9].mxu1 }
 0x4a7   : > { %v1013_v28 = vrot.slane %v1012_v26, 4 }
 0x4a9   : > { %v1014_v29 = vmax.f32 %v1012_v26, %v1013_v28 }
 0x4ab   : > { %v1015_v30 = vrot.slane %v1014_v29, 2 }
 0x4ad   : > { %v1016_v31 = vmax.f32 %v1014_v29, %v1015_v30 }
 0x4af   : > { %v1017_v32 = vrot.slane %v1016_v31, 1 }
 0x4b1   : > { %v1018_v33 = vmax.f32 %v1016_v31, %v1017_v32 }
 0x4b3   : > { %v1019_v34 = vsub.f32 %v1008_v25, %v1018_v33 }
 0x4b5   : > { %v1020_v35 = vmul.f32 1.442695, %v1019_v34 }
 0x4b7   : > { %2218 = vpow2.f32 %v1020_v35 }
 0x4c1   : > { %v2219_v36 = vpop.eup %2218 }
 0x4c2   : > { %v1022_v37 = vsel %vm763_vm14, %v2219_v36, 0.0 }
 0x4c3   : > { %v1023_v38 = vrot.slane %v1022_v37, 4 }
 0x4c5   : > { %v1024_v39 = vadd.f32 %v1023_v38, %v1022_v37 }
 0x4c7   : > { %v1025_v40 = vrot.slane %v1024_v39, 2 }
 0x4c9   : > { %v1026_v45 = vadd.f32 %v1025_v40, %v1024_v39 }
 0x4cb   : > { %v1027_v46 = vrot.slane %v1026_v45, 1 }
 0x4cd   : > { %v1028_v47 = vadd.f32 %v1027_v46, %v1026_v45 }
 0x4cf   : > { %2220 = vrcp.f32 %v1028_v47 }
 0x4d5   : > { %v1173_v48 = vpop.f32.mrb[10].mxu1 }
 0x4d6   : > { %v2108_v49 = vpop.f32.mrb[11].mxu1 }
 0x4d9   : > { %v2221_v55 = vpop.eup %2220 }
 0x4da   : > { %v1030_v57 = vmul.f32 %v2221_v55, %v2219_v36 }
 0x4dc   : > { %2102 = vmatmul.mubr.msk.f32.vlgmr.msra.gmra.mrb[4].mxu0 %vm763_vm14, %v1030_v57 }
 0x4dd   : > { %2110 = vmatpush3.xpose.msk.msra.mxu0 %vm385_vm0, %v1181_v50  ;;  %2111 = vmatprep.mubr.msk.f32.mxu0 %vm2241_vm2, %v2242_v15 }
 0x4de   : > { %2119 = vmatprep.subr.mxu0 %v2242_v15 }
 0x4e0   : > { %2112 = vmatmul.mubr.msk.f32.vlgmr.msra.gmra.mrb[6].mxu0 %vm385_vm0, %v1180_v51 }
 0x4e1   : > { %2120 = vmatpush3.msk.msra.mxu0 %vm2413_vm11, %v2456_v56  ;;  %2121 = vmatprep.mubr.msk.f32.mxu0 %vm2241_vm2, %v2242_v15 }
 0x4e2   : > { %2129 = vmatprep.subr.mxu0 %v2242_v15 }
 0x5af   : > { %v1100_v50 = vpop.f32.mrb[4].mxu0 }
 0x5b0   : > { %v1174_v58 = vadd.f32 %v1173_v48, %v1100_v50  ;;  %v2103_v59 = vpop.f32.mrb[5].mxu0 }
 0x5b3   : > { %v1255_v60 = vpop.f32.mrb[6].mxu0 }
 0x5b4   : > { %v1259_v61 = vmul.f32 0.35355338, %v1255_v60  ;;  %v2113_v62 = vpop.f32.mrb[7].mxu0 }
 0x5b6   : > { %2117 = vmatmul.mubr.msk.f32.vlgmr.msra.gmra.mrb[12].mxu1 %vm763_vm14, %v1259_v61  ;;  %v1705_v61 = vld [vmem:[%s2601_s5] sm:$0xff] }
 0x5b7   : > { %2125 = vmatpush3.xpose.msk.msra.mxu1 %vm385_vm0, %v1430_v52  ;;  %2126 = vmatprep.mubr.msk.f32.mxu1 %vm2241_vm2, %v2242_v15 }
 0x5b8   : > { %2134 = vmatprep.subr.mxu1 %v2242_v15 }
 0x5ba   : > { %2127 = vmatmul.mubr.msk.f32.vlgmr.msra.gmra.mrb[14].mxu1 %vm385_vm0, %v1429_v53 }
 0x5bb   : > { %2135 = vmatpush3.msk.msra.mxu1 %vm2417_vm12, %v2456_v56  ;;  %2136 = vmatprep.mubr.msk.f32.mxu1 %vm2241_vm2, %v2242_v15 }
 0x5bc   : > { %2193 = vmatprep.subr.bf16.mxu1 %v2240_v12 }
 0x689   : > { %v1329_v41 = vpop.f32.mrb[12].mxu1 }
 0x68a   : > { %v1333_v44 = vsel %vm763_vm14, %v1329_v41, -inf  ;;  %v2118_v51 = vpop.f32.mrb[13].mxu1 }
 0x68b   : > { %v1334_v52 = vrot.slane %v1333_v44, 4  ;;  %v1795_v51 = vld [vmem:[%s2602_s6] sm:$0xff] }
 0x68d   : > { %v1335_v63 = vmax.f32 %v1333_v44, %v1334_v52  ;;  %v1504_v1 = vpop.f32.mrb[14].mxu1  ;;  %v1796_v52 = vld [vmem:[%s2602_s6 + $0x8] sm:$0xff] }
 0x68e   : > { %v2128_v2 = vpop.f32.mrb[15].mxu1  ;;  %v1508_v18 = vmul.f32 0.35355338, %v1504_v1  ;;  %v1797_v1 = vld [vmem:[%s2602_s6 + $0x10] sm:$0xff] }
 0x68f   : > { %v1336_v43 = vrot.slane %v1335_v63, 2  ;;  %v1798_v2 = vld [vmem:[%s2602_s6 + $0x18] sm:$0xff] }
 0x691   : > { %v1337_v3 = vmax.f32 %v1335_v63, %v1336_v43  ;;  %v2194_v63 = vpack.c.bf16 %v1796_v52, %v1795_v51  ;;  %v2198_v43 = vpack.c.bf16 %v1798_v2, %v1797_v1 }
 0x693   : > { %v1338_v53 = vrot.slane %v1337_v3, 1 }
 0x695   : > { %v1339_v4 = vmax.f32 %v1337_v3, %v1338_v53 }
 0x697   : > { %v1340_v5 = vsub.f32 %v1329_v41, %v1339_v4  ;;  %v1708_v41 = vld [vmem:[%s2601_s5 + $0x18] sm:$0xff] }
 0x699   : > { %v1341_v42 = vmul.f32 1.442695, %v1340_v5 }
 0x69b   : > { %2222 = vpow2.f32 %v1341_v42 }
 0x6a5   : > { %v2223_v56 = vpop.eup %2222 }
 0x6a6   : > { %v1343_v6 = vsel %vm763_vm14, %v2223_v56, 0.0 }
 0x6a7   : > { %v1344_v7 = vrot.slane %v1343_v6, 4 }
 0x6a9   : > { %v1345_v8 = vadd.f32 %v1344_v7, %v1343_v6 }
 0x6ab   : > { %v1346_v9 = vrot.slane %v1345_v8, 2 }
 0x6ad   : > { %v1347_v10 = vadd.f32 %v1346_v9, %v1345_v8 }
 0x6af   : > { %v1348_v11 = vrot.slane %v1347_v10, 1 }
 0x6b1   : > { %v1349_v14 = vadd.f32 %v1348_v11, %v1347_v10 }
 0x6b3   : > { %2224 = vrcp.f32 %v1349_v14 }
 0x6bd   : > { %v2225_v16 = vpop.eup %2224 }
 0x6be   : > { %v1351_v17 = vmul.f32 %v2225_v16, %v2223_v56  ;;  %v1984_v56 = vld [vmem:[%s2606_s10] ss:$0 sm:$0xff] }
 0x6c0   : > { %2122 = vmatmul.mubr.msk.f32.vlgmr.msra.gmra.mrb[8].mxu0 %vm763_vm14, %v1351_v17 }
 0x6c1   : > { %2130 = vmatpush3.msra.mxu0 %v2447_v54  ;;  %2131 = vmatprep.mubr.msk.f32.mxu0 %vm2241_vm2, %v2242_v15 }
 0x6c2   : > { %2185 = vmatprep.subr.bf16.mxu0 %v2240_v12 }
 0x6c4   : > { %2132 = vmatmul.mubr.msk.f32.vlgmr.msra.gmra.mrb[10].mxu0 %vm763_vm14, %v1508_v18 }
 0x6c5   : > { %2147 = vmatprep.mubr.msk.f32.mxu0 %vm2241_vm2, %v2242_v15 }
 0x793   : > { %v1421_v19 = vpop.f32.mrb[8].mxu0 }
 0x794   : > { %v1425_v20 = vadd.f32 %v1421_v19, %v1174_v58  ;;  %v2123_v21 = vpop.f32.mrb[9].mxu0 }
 0x797   : > { %v1578_v22 = vpop.f32.mrb[10].mxu0 }
 0x798   : > { %v1582_v23 = vsel %vm763_vm14, %v1578_v22, -inf  ;;  %v2133_v24 = vpop.f32.mrb[11].mxu0 }
 0x799   : > { %v1583_v25 = vrot.slane %v1582_v23, 4 }
 0x79b   : > { %v1584_v54 = vmax.f32 %v1582_v23, %v1583_v25 }
 0x79d   : > { %v1585_v26 = vrot.slane %v1584_v54, 2 }
 0x79f   : > { %v1586_v27 = vmax.f32 %v1584_v54, %v1585_v26 }
 0x7a1   : > { %v1587_v28 = vrot.slane %v1586_v27, 1 }
 0x7a3   : > { %v1588_v29 = vmax.f32 %v1586_v27, %v1587_v28 }
 0x7a5   : > { %v1589_v30 = vsub.f32 %v1578_v22, %v1588_v29 }
 0x7a7   : > { %v1590_v31 = vmul.f32 1.442695, %v1589_v30 }
 0x7a9   : > { %2226 = vpow2.f32 %v1590_v31 }
 0x7b3   : > { %v2227_v32 = vpop.eup %2226 }
 0x7b4   : > { %v1592_v33 = vsel %vm763_vm14, %v2227_v32, 0.0 }
 0x7b5   : > { %v1593_v34 = vrot.slane %v1592_v33, 4 }
 0x7b7   : > { %v1594_v35 = vadd.f32 %v1593_v34, %v1592_v33 }
 0x7b9   : > { %v1595_v36 = vrot.slane %v1594_v35, 2 }
 0x7bb   : > { %v1596_v37 = vadd.f32 %v1595_v36, %v1594_v35 }
 0x7bd   : > { %v1597_v38 = vrot.slane %v1596_v37, 1 }
 0x7bf   : > { %v1598_v39 = vadd.f32 %v1597_v38, %v1596_v37 }
 0x7c1   : > { %2228 = vrcp.f32 %v1598_v39 }
 0x7cb   : > { %v2229_v40 = vpop.eup %2228 }
 0x7cc   : > { %v1600_v45 = vmul.f32 %v2229_v40, %v2227_v32 }
 0x7ce   : > { %2137 = vmatmul.mubr.msk.f32.vlgmr.msra.gmra.mrb[16].mxu1 %vm763_vm14, %v1600_v45 }
 0x7cf   : > { %2158 = vmatprep.mubr.msk.f32.mxu1 %vm2241_vm2, %v2242_v15  ;;  %v1706_v15 = vld [vmem:[%s2601_s5 + $0x8] sm:$0xff]  ;;  %2196 = vmatpush3.bf16.xpose.msk.msra.mxu1 %vm2340_vm1, %v2194_v63 }
 0x7d0   : > { %v2186_v62 = vpack.c.bf16 %v1706_v15, %v1705_v61  ;;  %2197 = vmatprep.subr.bf16.mxu1 %v2240_v12 }
 0x7d2   : > { %2188 = vmatpush3.bf16.xpose.msk.msra.mxu0 %vm2340_vm1, %v2186_v62 }
 0x7d3   : > { %2189 = vmatprep.subr.bf16.mxu0 %v2240_v12  ;;  %v1983_v12 = vld [vmem:[%s2605_s9] ss:$0 sm:$0xff] }
 0x7d7   : > { %2200 = vmatpush3.bf16.xpose.msk.msra.mxu1 %vm2340_vm1, %v2198_v43 }
 0x8a1   : > { %v1670_v46 = vpop.f32.mrb[16].mxu1 }
 0x8a2   : > { %v1674_v47 = vadd.f32 %v1670_v46, %v1425_v20  ;;  %v2138_v48 = vpop.f32.mrb[17].mxu1 }
 0x8a4   : > { %v1675_v49 = vadd.f32 %v1674_v47, %v2319_v0  ;;  %v1707_v0 = vld [vmem:[%s2601_s5 + $0x10] sm:$0xff] }
 0x8a5   : > { %v2190_v44 = vpack.c.bf16 %v1708_v41, %v1707_v0 }
 0x8a6   : > { %v1678_v55 = vsel %vm385_vm0, %v1675_v49, 0.0 }
 0x8a7   : > { %1679 = vadd.xlane.f32.xlu1 %v1678_v55  ;;  %2192 = vmatpush3.bf16.xpose.msk.msra.mxu0 %vm2340_vm1, %v2190_v44 }
 0x934   : > { %v1680_v57 = vpop.xlane.xlu1 %1679 }
 0x935   : > { %v1681_v50 = vmul.f32 0.03125, %v1680_v57 }
 0x937   : > { %v1682_v58 = vsub.f32 %v1675_v49, %v1681_v50 }
 0x939   : > { %v1683_v59 = vmul.f32 %v1682_v58, %v1682_v58 }
 0x93b   : > { %v1684_v60 = vsel %vm385_vm0, %v1683_v59, 0.0 }
 0x93c   : > { %1685 = vadd.xlane.f32.xlu1 %v1684_v60 }
 0x9c9   : > { %v1686_v3 = vpop.xlane.xlu1 %1685 }
 0x9ca   : > { %v1687_v53 = vmul.f32 0.03125, %v1686_v3 }
 0x9cc   : > { %v1688_v4 = vadd.f32 1e-05, %v1687_v53 }
 0x9ce   : > { %2230 = vrsqrt.f32 %v1688_v4 }
 0x9d8   : > { %v2231_v5 = vpop.eup %2230 }
 0x9d9   : > { %v1690_v42 = vmul.f32 %v2231_v5, %v1682_v58 }
 0x9db   : > { %v1697_v6 = vmul.f32 %v1983_v12, %v1690_v42 }
 0x9dd   : > { %v1704_v7 = vadd.f32 %v1984_v56, %v1697_v6 }
 0x9df   : > { %2148 = vmatmul.mubr.msk.f32.vlgmr.msra.gmra.mrb[12].mxu0 %vm385_vm0, %v1704_v7 }
 0xab2   : > { %v1790_v13 = vpop.f32.mrb[12].mxu0 }
 0xab3   : > { %v1794_v8 = vmax.f32 %v1790_v13, 0.0  ;;  %v2149_v9 = vpop.f32.mrb[13].mxu0 }
 0xab5   : > { %2159 = vmatmul.mubr.msk.f32.vlgmr.msra.gmra.mrb[18].mxu1 %vm385_vm0, %v1794_v8 }
 0xb88   : > { %v1880_v10 = vpop.f32.mrb[18].mxu1 }
 0xb89   : > { %v1884_v11 = vadd.f32 %v1880_v10, %v1675_v49  ;;  %v2160_v14 = vpop.f32.mrb[19].mxu1 }
 0xb8b   : > { %1885 = vst.msk [vmem:[%s381_s27] sm:$0xff] %vm385_vm0, %v1884_v11 }
 0xb8c PF: > { %s21_s17 = sadd.s32 1, %s2238_s17  }
 0xb8d   : > { %p18_p4 = scmp.ge.s32.totalorder %s21_s17, 4  }
 0xb8f   :  { %20 = sbr.rel (!%p18_p4) target bundleno = 1 (0x1), region = 94 }

</bundles_post_ra>
